<compile_context>
chip_gen: v6e
topology: v6e:2x2x1
jax: 0.10.0
libtpu: 0.0.40
codegen_flags: <defaults>
</compile_context>

<pallas_src>
import jax
import jax.numpy as jnp
from jax import lax
from jax.experimental import pallas as pl
from jax.experimental.pallas import tpu as pltpu

# ---- static network geometry (from the PyTorch module) ----------------------
# conv1: Conv1d(2+nc,   8, k=4, s=2, p=1)   L: 24 -> 12
# conv2: Conv1d(  8,   32, k=4, s=2, p=1)   L: 12 ->  6
# conv3: Conv1d( 32,  128, k=3, s=2, p=1)   L:  6 ->  3
# conv4: Conv1d(128,   nz, k=2, s=1, p=0)   L:  3 ->  2
L_IN = 24
CONV_CFG = [
    # (K, stride, pad, L_in, L_out)
    (4, 2, 1, 24, 12),
    (4, 2, 1, 12, 6),
    (3, 2, 1, 6, 3),
    (2, 1, 0, 3, 2),
]


def encoder_kernel(x_ref, c_ref, w1_ref, w2_ref, w3_ref, w4_ref, o_ref):
    """x_ref: (TB, 24, 2)   c_ref: (TB, nc)
    w*_ref: (K*C_in, C_out) pre-flattened   o_ref: (TB, 2*nz)."""
    TB = x_ref.shape[0]
    x = x_ref[...].astype(jnp.float32)        # (TB, 24, 2)
    cvec = c_ref[...].astype(jnp.float32)     # (TB, nc)
    nc = cvec.shape[-1]

    # Fused concat([x, c.repeat(1,1,24)]) in channels-last layout, then keep
    # the activation as a Python list of per-position columns (TB, C) so no
    # in-kernel reshapes / relayouts are ever needed.
    y0 = jnp.concatenate(
        [x, jnp.broadcast_to(cvec[:, None, :], (TB, L_IN, nc))], axis=-1)
    cols = [y0[:, l, :] for l in range(L_IN)]          # each (TB, 2+nc)

    for w_ref, (K, s, p, li, lo) in zip((w1_ref, w2_ref, w3_ref, w4_ref),
                                        CONV_CFG):
        w = w_ref[...].astype(jnp.float32)             # (K*C_in, C_out)
        zero = jnp.zeros_like(cols[0])
        patches = []
        for t in range(lo):                            # static, tiny L_out
            parts = []
            for k in range(K):
                src = t * s - p + k
                # zero-padding handled by substituting a zero column
                parts.append(cols[src] if 0 <= src < li else zero)
            patches.append(jnp.concatenate(parts, axis=-1))   # (TB, K*C_in)
        big = jnp.concatenate(patches, axis=0)                # (lo*TB, K*C_in)
        out = jnp.dot(big, w, preferred_element_type=jnp.float32)  # one MXU push
        cols = [out[t * TB:(t + 1) * TB, :] for t in range(lo)]

    # lane-dense output slab: [t=0 channels | t=1 channels]
    o_ref[...] = jnp.concatenate(cols, axis=-1).astype(o_ref.dtype)


def graphc_cnn_encoder(x, c, w1, w2, w3, w4, *, block_b=256):
    """Pallas forward.
    x: (B, 2, 24), c: (B, nc, 1)  (PyTorch NCW)
    w1..w4: PyTorch Conv1d layout (C_out, C_in, K), bias-free.
    Returns (B, nz, 2) in PyTorch NCW layout."""
    B = x.shape[0]
    nc = c.shape[1]
    nz = w4.shape[0]

    # cheap layout glue (tiny tensors): x -> channels-last, c -> (B, nc)
    x_nlc = jnp.transpose(x, (0, 2, 1))                    # (B, 24, 2)
    c2d = c[:, :, 0]                                       # (B, nc)
    # pre-flatten weights to (K*C_in, C_out): flat[k*C_in + ci, co] = w[co, ci, k]
    wflat = [jnp.transpose(w, (2, 1, 0)).reshape(w.shape[2] * w.shape[1],
                                                 w.shape[0])
             for w in (w1, w2, w3, w4)]

    TB = max(1, min(block_b, B))
    grid = (pl.cdiv(B, TB),)

    flops = 2 * B * (12 * 20 * 8 + 6 * 32 * 32 + 3 * 96 * 128 + 2 * 256 * nz)
    bytes_accessed = (
        x_nlc.size * x_nlc.dtype.itemsize
        + c2d.size * c2d.dtype.itemsize
        + sum(w.size * w.dtype.itemsize for w in wflat)
        + B * 2 * nz * x.dtype.itemsize)

    out2d = pl.pallas_call(
        encoder_kernel,
        out_shape=jax.ShapeDtypeStruct((B, 2 * nz), x.dtype),
        grid=grid,
        in_specs=[
            pl.BlockSpec((TB, L_IN, 2), lambda i: (i, 0, 0)),
            pl.BlockSpec((TB, nc), lambda i: (i, 0)),
            # weights: full-array blocks, constant index -> resident, DMA'd once
            pl.BlockSpec(wflat[0].shape, lambda i: (0, 0)),
            pl.BlockSpec(wflat[1].shape, lambda i: (0, 0)),
            pl.BlockSpec(wflat[2].shape, lambda i: (0, 0)),
            pl.BlockSpec(wflat[3].shape, lambda i: (0, 0)),
        ],
        out_specs=pl.BlockSpec((TB, 2 * nz), lambda i: (i, 0)),
        compiler_params=pltpu.CompilerParams(
            dimension_semantics=("parallel",)),
        cost_estimate=pl.CostEstimate(flops=flops, transcendentals=0,
                                      bytes_accessed=bytes_accessed),
    )(x_nlc, c2d, *wflat)

    # (B, 2*nz) -> (B, 2, nz) -> NCW (B, nz, 2)
    return jnp.transpose(out2d.reshape(B, 2, nz), (0, 2, 1))


# ---------------------------- pure-JAX reference ------------------------------
def _ref_forward(x, c, w1, w2, w3, w4):
    y = jnp.concatenate([x, jnp.tile(c, (1, 1, L_IN))], axis=1)
    dn = lax.conv_dimension_numbers(y.shape, w1.shape, ("NCH", "OIH", "NCH"))

    def conv(z, w, s, p):
        return lax.conv_general_dilated(z, w, (s,), [(p, p)],
                                        dimension_numbers=dn)
    y = conv(y, w1, 2, 1)
    y = conv(y, w2, 2, 1)
    y = conv(y, w3, 2, 1)
    return conv(y, w4, 1, 0)


if __name__ == "__main__":
    nc, nz = 3, 16
    key = jax.random.PRNGKey(0)
    kx, kc, k1, k2, k3, k4, kx2, kc2 = jax.random.split(key, 8)

    # deterministic weights, PyTorch Conv1d layout (C_out, C_in, K), bias=False
    w1 = 0.1 * jax.random.normal(k1, (8, 2 + nc, 4), jnp.float32)
    w2 = 0.1 * jax.random.normal(k2, (32, 8, 4), jnp.float32)
    w3 = 0.1 * jax.random.normal(k3, (128, 32, 3), jnp.float32)
    w4 = 0.1 * jax.random.normal(k4, (nz, 128, 2), jnp.float32)

    # --- small batch, single grid step -------------------------------------
    B = 2
    x = jax.random.normal(kx, (B, 2, L_IN), jnp.float32)
    c = jax.random.normal(kc, (B, nc, 1), jnp.float32)
    out = jax.block_until_ready(graphc_cnn_encoder(x, c, w1, w2, w3, w4))
    assert out.shape == (B, nz, 2), out.shape
    ref = _ref_forward(x, c, w1, w2, w3, w4)
    assert jnp.allclose(out, ref, rtol=1e-2, atol=1e-2), \
        float(jnp.max(jnp.abs(out - ref)))

    # --- multi-tile batch (exercises the grid / pipelined path) ------------
    B2 = 16
    x2 = jax.random.normal(kx2, (B2, 2, L_IN), jnp.float32)
    c2 = jax.random.normal(kc2, (B2, nc, 1), jnp.float32)
    out2 = jax.block_until_ready(
        graphc_cnn_encoder(x2, c2, w1, w2, w3, w4, block_b=8))
    assert out2.shape == (B2, nz, 2), out2.shape
    ref2 = _ref_forward(x2, c2, w1, w2, w3, w4)
    assert jnp.allclose(out2, ref2, rtol=1e-2, atol=1e-2), \
        float(jnp.max(jnp.abs(out2 - ref2)))

    print("KERNEL_OK")
</pallas_src>

<mosaic_0001>
module attributes {stable_mosaic.version = 11 : i64} {
  func.func @encoder_kernel(%arg0: i32, %arg1: memref<2x24x2xf32, #tpu.memory_space<vmem>>, %arg2: memref<2x3xf32, #tpu.memory_space<vmem>>, %arg3: memref<20x8xf32, #tpu.memory_space<vmem>>, %arg4: memref<32x32xf32, #tpu.memory_space<vmem>>, %arg5: memref<96x128xf32, #tpu.memory_space<vmem>>, %arg6: memref<256x16xf32, #tpu.memory_space<vmem>>, %arg7: memref<2x32xf32, #tpu.memory_space<vmem>>) attributes {dimension_semantics = [#tpu.dimension_semantics<parallel>], iteration_bounds = array<i64: 1>, scalar_prefetch = 0 : i64, scratch_operands = 0 : i64, tpu.core_type = #tpu.core_type<tc>, window_params = [{transform_indices = @transform_0, window_bounds = array<i64: 2, 24, 2>}, {transform_indices = @transform_1, window_bounds = array<i64: 2, 3>}, {pipeline_mode = #tpu.pipeline_mode<synchronous>, transform_indices = @transform_2, window_bounds = array<i64: 20, 8>}, {pipeline_mode = #tpu.pipeline_mode<synchronous>, transform_indices = @transform_3, window_bounds = array<i64: 32, 32>}, {pipeline_mode = #tpu.pipeline_mode<synchronous>, transform_indices = @transform_4, window_bounds = array<i64: 96, 128>}, {pipeline_mode = #tpu.pipeline_mode<synchronous>, transform_indices = @transform_5, window_bounds = array<i64: 256, 16>}, {transform_indices = @transform_6, window_bounds = array<i64: 2, 32>}]} {
    %c0 = arith.constant 0 : index
    %c0_0 = arith.constant 0 : index
    %c0_1 = arith.constant 0 : index
    %0 = vector.load %arg1[%c0, %c0_0, %c0_1] : memref<2x24x2xf32, #tpu.memory_space<vmem>>, vector<2x24x2xf32>
    %c0_2 = arith.constant 0 : index
    %c0_3 = arith.constant 0 : index
    %1 = vector.load %arg2[%c0_2, %c0_3] : memref<2x3xf32, #tpu.memory_space<vmem>>, vector<2x3xf32>
    %2 = vector.shape_cast %1 : vector<2x3xf32> to vector<2x1x3xf32>
    %3 = vector.shape_cast %2 : vector<2x1x3xf32> to vector<2x1x3xf32>
    %4 = vector.broadcast %3 : vector<2x1x3xf32> to vector<2x24x3xf32>
    %5 = tpu.concatenate %0, %4 in 2 : vector<2x24x2xf32>, vector<2x24x3xf32> -> vector<2x24x5xf32>
    %6 = vector.extract_strided_slice %5 {offsets = [0, 0, 0], sizes = [2, 1, 5], strides = [1, 1, 1]} : vector<2x24x5xf32> to vector<2x1x5xf32>
    %7 = vector.shape_cast %6 : vector<2x1x5xf32> to vector<2x5xf32>
    %8 = vector.extract_strided_slice %5 {offsets = [0, 1, 0], sizes = [2, 1, 5], strides = [1, 1, 1]} : vector<2x24x5xf32> to vector<2x1x5xf32>
    %9 = vector.shape_cast %8 : vector<2x1x5xf32> to vector<2x5xf32>
    %10 = vector.extract_strided_slice %5 {offsets = [0, 2, 0], sizes = [2, 1, 5], strides = [1, 1, 1]} : vector<2x24x5xf32> to vector<2x1x5xf32>
    %11 = vector.shape_cast %10 : vector<2x1x5xf32> to vector<2x5xf32>
    %12 = vector.extract_strided_slice %5 {offsets = [0, 3, 0], sizes = [2, 1, 5], strides = [1, 1, 1]} : vector<2x24x5xf32> to vector<2x1x5xf32>
    %13 = vector.shape_cast %12 : vector<2x1x5xf32> to vector<2x5xf32>
    %14 = vector.extract_strided_slice %5 {offsets = [0, 4, 0], sizes = [2, 1, 5], strides = [1, 1, 1]} : vector<2x24x5xf32> to vector<2x1x5xf32>
    %15 = vector.shape_cast %14 : vector<2x1x5xf32> to vector<2x5xf32>
    %16 = vector.extract_strided_slice %5 {offsets = [0, 5, 0], sizes = [2, 1, 5], strides = [1, 1, 1]} : vector<2x24x5xf32> to vector<2x1x5xf32>
    %17 = vector.shape_cast %16 : vector<2x1x5xf32> to vector<2x5xf32>
    %18 = vector.extract_strided_slice %5 {offsets = [0, 6, 0], sizes = [2, 1, 5], strides = [1, 1, 1]} : vector<2x24x5xf32> to vector<2x1x5xf32>
    %19 = vector.shape_cast %18 : vector<2x1x5xf32> to vector<2x5xf32>
    %20 = vector.extract_strided_slice %5 {offsets = [0, 7, 0], sizes = [2, 1, 5], strides = [1, 1, 1]} : vector<2x24x5xf32> to vector<2x1x5xf32>
    %21 = vector.shape_cast %20 : vector<2x1x5xf32> to vector<2x5xf32>
    %22 = vector.extract_strided_slice %5 {offsets = [0, 8, 0], sizes = [2, 1, 5], strides = [1, 1, 1]} : vector<2x24x5xf32> to vector<2x1x5xf32>
    %23 = vector.shape_cast %22 : vector<2x1x5xf32> to vector<2x5xf32>
    %24 = vector.extract_strided_slice %5 {offsets = [0, 9, 0], sizes = [2, 1, 5], strides = [1, 1, 1]} : vector<2x24x5xf32> to vector<2x1x5xf32>
    %25 = vector.shape_cast %24 : vector<2x1x5xf32> to vector<2x5xf32>
    %26 = vector.extract_strided_slice %5 {offsets = [0, 10, 0], sizes = [2, 1, 5], strides = [1, 1, 1]} : vector<2x24x5xf32> to vector<2x1x5xf32>
    %27 = vector.shape_cast %26 : vector<2x1x5xf32> to vector<2x5xf32>
    %28 = vector.extract_strided_slice %5 {offsets = [0, 11, 0], sizes = [2, 1, 5], strides = [1, 1, 1]} : vector<2x24x5xf32> to vector<2x1x5xf32>
    %29 = vector.shape_cast %28 : vector<2x1x5xf32> to vector<2x5xf32>
    %30 = vector.extract_strided_slice %5 {offsets = [0, 12, 0], sizes = [2, 1, 5], strides = [1, 1, 1]} : vector<2x24x5xf32> to vector<2x1x5xf32>
    %31 = vector.shape_cast %30 : vector<2x1x5xf32> to vector<2x5xf32>
    %32 = vector.extract_strided_slice %5 {offsets = [0, 13, 0], sizes = [2, 1, 5], strides = [1, 1, 1]} : vector<2x24x5xf32> to vector<2x1x5xf32>
    %33 = vector.shape_cast %32 : vector<2x1x5xf32> to vector<2x5xf32>
    %34 = vector.extract_strided_slice %5 {offsets = [0, 14, 0], sizes = [2, 1, 5], strides = [1, 1, 1]} : vector<2x24x5xf32> to vector<2x1x5xf32>
    %35 = vector.shape_cast %34 : vector<2x1x5xf32> to vector<2x5xf32>
    %36 = vector.extract_strided_slice %5 {offsets = [0, 15, 0], sizes = [2, 1, 5], strides = [1, 1, 1]} : vector<2x24x5xf32> to vector<2x1x5xf32>
    %37 = vector.shape_cast %36 : vector<2x1x5xf32> to vector<2x5xf32>
    %38 = vector.extract_strided_slice %5 {offsets = [0, 16, 0], sizes = [2, 1, 5], strides = [1, 1, 1]} : vector<2x24x5xf32> to vector<2x1x5xf32>
    %39 = vector.shape_cast %38 : vector<2x1x5xf32> to vector<2x5xf32>
    %40 = vector.extract_strided_slice %5 {offsets = [0, 17, 0], sizes = [2, 1, 5], strides = [1, 1, 1]} : vector<2x24x5xf32> to vector<2x1x5xf32>
    %41 = vector.shape_cast %40 : vector<2x1x5xf32> to vector<2x5xf32>
    %42 = vector.extract_strided_slice %5 {offsets = [0, 18, 0], sizes = [2, 1, 5], strides = [1, 1, 1]} : vector<2x24x5xf32> to vector<2x1x5xf32>
    %43 = vector.shape_cast %42 : vector<2x1x5xf32> to vector<2x5xf32>
    %44 = vector.extract_strided_slice %5 {offsets = [0, 19, 0], sizes = [2, 1, 5], strides = [1, 1, 1]} : vector<2x24x5xf32> to vector<2x1x5xf32>
    %45 = vector.shape_cast %44 : vector<2x1x5xf32> to vector<2x5xf32>
    %46 = vector.extract_strided_slice %5 {offsets = [0, 20, 0], sizes = [2, 1, 5], strides = [1, 1, 1]} : vector<2x24x5xf32> to vector<2x1x5xf32>
    %47 = vector.shape_cast %46 : vector<2x1x5xf32> to vector<2x5xf32>
    %48 = vector.extract_strided_slice %5 {offsets = [0, 21, 0], sizes = [2, 1, 5], strides = [1, 1, 1]} : vector<2x24x5xf32> to vector<2x1x5xf32>
    %49 = vector.shape_cast %48 : vector<2x1x5xf32> to vector<2x5xf32>
    %50 = vector.extract_strided_slice %5 {offsets = [0, 22, 0], sizes = [2, 1, 5], strides = [1, 1, 1]} : vector<2x24x5xf32> to vector<2x1x5xf32>
    %51 = vector.shape_cast %50 : vector<2x1x5xf32> to vector<2x5xf32>
    %52 = vector.extract_strided_slice %5 {offsets = [0, 23, 0], sizes = [2, 1, 5], strides = [1, 1, 1]} : vector<2x24x5xf32> to vector<2x1x5xf32>
    %53 = vector.shape_cast %52 : vector<2x1x5xf32> to vector<2x5xf32>
    %c0_4 = arith.constant 0 : index
    %c0_5 = arith.constant 0 : index
    %54 = vector.load %arg3[%c0_4, %c0_5] : memref<20x8xf32, #tpu.memory_space<vmem>>, vector<20x8xf32>
    %cst = arith.constant 0.000000e+00 : f32
    %55 = vector.broadcast %cst : f32 to vector<2x5xf32>
    %56 = tpu.concatenate %55, %7, %9, %11 in 1 : vector<2x5xf32>, vector<2x5xf32>, vector<2x5xf32>, vector<2x5xf32> -> vector<2x20xf32>
    %57 = tpu.concatenate %9, %11, %13, %15 in 1 : vector<2x5xf32>, vector<2x5xf32>, vector<2x5xf32>, vector<2x5xf32> -> vector<2x20xf32>
    %58 = tpu.concatenate %13, %15, %17, %19 in 1 : vector<2x5xf32>, vector<2x5xf32>, vector<2x5xf32>, vector<2x5xf32> -> vector<2x20xf32>
    %59 = tpu.concatenate %17, %19, %21, %23 in 1 : vector<2x5xf32>, vector<2x5xf32>, vector<2x5xf32>, vector<2x5xf32> -> vector<2x20xf32>
    %60 = tpu.concatenate %21, %23, %25, %27 in 1 : vector<2x5xf32>, vector<2x5xf32>, vector<2x5xf32>, vector<2x5xf32> -> vector<2x20xf32>
    %61 = tpu.concatenate %25, %27, %29, %31 in 1 : vector<2x5xf32>, vector<2x5xf32>, vector<2x5xf32>, vector<2x5xf32> -> vector<2x20xf32>
    %62 = tpu.concatenate %29, %31, %33, %35 in 1 : vector<2x5xf32>, vector<2x5xf32>, vector<2x5xf32>, vector<2x5xf32> -> vector<2x20xf32>
    %63 = tpu.concatenate %33, %35, %37, %39 in 1 : vector<2x5xf32>, vector<2x5xf32>, vector<2x5xf32>, vector<2x5xf32> -> vector<2x20xf32>
    %64 = tpu.concatenate %37, %39, %41, %43 in 1 : vector<2x5xf32>, vector<2x5xf32>, vector<2x5xf32>, vector<2x5xf32> -> vector<2x20xf32>
    %65 = tpu.concatenate %41, %43, %45, %47 in 1 : vector<2x5xf32>, vector<2x5xf32>, vector<2x5xf32>, vector<2x5xf32> -> vector<2x20xf32>
    %66 = tpu.concatenate %45, %47, %49, %51 in 1 : vector<2x5xf32>, vector<2x5xf32>, vector<2x5xf32>, vector<2x5xf32> -> vector<2x20xf32>
    %67 = tpu.concatenate %49, %51, %53, %55 in 1 : vector<2x5xf32>, vector<2x5xf32>, vector<2x5xf32>, vector<2x5xf32> -> vector<2x20xf32>
    %68 = tpu.concatenate %56, %57, %58, %59, %60, %61, %62, %63, %64, %65, %66, %67 in 0 : vector<2x20xf32>, vector<2x20xf32>, vector<2x20xf32>, vector<2x20xf32>, vector<2x20xf32>, vector<2x20xf32>, vector<2x20xf32>, vector<2x20xf32>, vector<2x20xf32>, vector<2x20xf32>, vector<2x20xf32>, vector<2x20xf32> -> vector<24x20xf32>
    %cst_6 = arith.constant dense<0.000000e+00> : vector<24x8xf32>
    %69 = tpu.matmul %68, %54, %cst_6 {dimension_numbers = #tpu.dot_dimension_numbers<[1], [0], [0], [1], [0, 0, 1, 1], [], []>} : vector<24x20xf32>, vector<20x8xf32>, vector<24x8xf32> -> vector<24x8xf32>
    %70 = vector.extract_strided_slice %69 {offsets = [0, 0], sizes = [2, 8], strides = [1, 1]} : vector<24x8xf32> to vector<2x8xf32>
    %71 = vector.extract_strided_slice %69 {offsets = [2, 0], sizes = [2, 8], strides = [1, 1]} : vector<24x8xf32> to vector<2x8xf32>
    %72 = vector.extract_strided_slice %69 {offsets = [4, 0], sizes = [2, 8], strides = [1, 1]} : vector<24x8xf32> to vector<2x8xf32>
    %73 = vector.extract_strided_slice %69 {offsets = [6, 0], sizes = [2, 8], strides = [1, 1]} : vector<24x8xf32> to vector<2x8xf32>
    %74 = vector.extract_strided_slice %69 {offsets = [8, 0], sizes = [2, 8], strides = [1, 1]} : vector<24x8xf32> to vector<2x8xf32>
    %75 = vector.extract_strided_slice %69 {offsets = [10, 0], sizes = [2, 8], strides = [1, 1]} : vector<24x8xf32> to vector<2x8xf32>
    %76 = vector.extract_strided_slice %69 {offsets = [12, 0], sizes = [2, 8], strides = [1, 1]} : vector<24x8xf32> to vector<2x8xf32>
    %77 = vector.extract_strided_slice %69 {offsets = [14, 0], sizes = [2, 8], strides = [1, 1]} : vector<24x8xf32> to vector<2x8xf32>
    %78 = vector.extract_strided_slice %69 {offsets = [16, 0], sizes = [2, 8], strides = [1, 1]} : vector<24x8xf32> to vector<2x8xf32>
    %79 = vector.extract_strided_slice %69 {offsets = [18, 0], sizes = [2, 8], strides = [1, 1]} : vector<24x8xf32> to vector<2x8xf32>
    %80 = vector.extract_strided_slice %69 {offsets = [20, 0], sizes = [2, 8], strides = [1, 1]} : vector<24x8xf32> to vector<2x8xf32>
    %81 = vector.extract_strided_slice %69 {offsets = [22, 0], sizes = [2, 8], strides = [1, 1]} : vector<24x8xf32> to vector<2x8xf32>
    %c0_7 = arith.constant 0 : index
    %c0_8 = arith.constant 0 : index
    %82 = vector.load %arg4[%c0_7, %c0_8] : memref<32x32xf32, #tpu.memory_space<vmem>>, vector<32x32xf32>
    %cst_9 = arith.constant 0.000000e+00 : f32
    %83 = vector.broadcast %cst_9 : f32 to vector<2x8xf32>
    %84 = tpu.concatenate %83, %70, %71, %72 in 1 : vector<2x8xf32>, vector<2x8xf32>, vector<2x8xf32>, vector<2x8xf32> -> vector<2x32xf32>
    %85 = tpu.concatenate %71, %72, %73, %74 in 1 : vector<2x8xf32>, vector<2x8xf32>, vector<2x8xf32>, vector<2x8xf32> -> vector<2x32xf32>
    %86 = tpu.concatenate %73, %74, %75, %76 in 1 : vector<2x8xf32>, vector<2x8xf32>, vector<2x8xf32>, vector<2x8xf32> -> vector<2x32xf32>
    %87 = tpu.concatenate %75, %76, %77, %78 in 1 : vector<2x8xf32>, vector<2x8xf32>, vector<2x8xf32>, vector<2x8xf32> -> vector<2x32xf32>
    %88 = tpu.concatenate %77, %78, %79, %80 in 1 : vector<2x8xf32>, vector<2x8xf32>, vector<2x8xf32>, vector<2x8xf32> -> vector<2x32xf32>
    %89 = tpu.concatenate %79, %80, %81, %83 in 1 : vector<2x8xf32>, vector<2x8xf32>, vector<2x8xf32>, vector<2x8xf32> -> vector<2x32xf32>
    %90 = tpu.concatenate %84, %85, %86, %87, %88, %89 in 0 : vector<2x32xf32>, vector<2x32xf32>, vector<2x32xf32>, vector<2x32xf32>, vector<2x32xf32>, vector<2x32xf32> -> vector<12x32xf32>
    %cst_10 = arith.constant dense<0.000000e+00> : vector<12x32xf32>
    %91 = tpu.matmul %90, %82, %cst_10 {dimension_numbers = #tpu.dot_dimension_numbers<[1], [0], [0], [1], [0, 0, 1, 1], [], []>} : vector<12x32xf32>, vector<32x32xf32>, vector<12x32xf32> -> vector<12x32xf32>
    %92 = vector.extract_strided_slice %91 {offsets = [0, 0], sizes = [2, 32], strides = [1, 1]} : vector<12x32xf32> to vector<2x32xf32>
    %93 = vector.extract_strided_slice %91 {offsets = [2, 0], sizes = [2, 32], strides = [1, 1]} : vector<12x32xf32> to vector<2x32xf32>
    %94 = vector.extract_strided_slice %91 {offsets = [4, 0], sizes = [2, 32], strides = [1, 1]} : vector<12x32xf32> to vector<2x32xf32>
    %95 = vector.extract_strided_slice %91 {offsets = [6, 0], sizes = [2, 32], strides = [1, 1]} : vector<12x32xf32> to vector<2x32xf32>
    %96 = vector.extract_strided_slice %91 {offsets = [8, 0], sizes = [2, 32], strides = [1, 1]} : vector<12x32xf32> to vector<2x32xf32>
    %97 = vector.extract_strided_slice %91 {offsets = [10, 0], sizes = [2, 32], strides = [1, 1]} : vector<12x32xf32> to vector<2x32xf32>
    %c0_11 = arith.constant 0 : index
    %c0_12 = arith.constant 0 : index
    %98 = vector.load %arg5[%c0_11, %c0_12] : memref<96x128xf32, #tpu.memory_space<vmem>>, vector<96x128xf32>
    %cst_13 = arith.constant 0.000000e+00 : f32
    %99 = vector.broadcast %cst_13 : f32 to vector<2x32xf32>
    %100 = tpu.concatenate %99, %92, %93 in 1 : vector<2x32xf32>, vector<2x32xf32>, vector<2x32xf32> -> vector<2x96xf32>
    %101 = tpu.concatenate %93, %94, %95 in 1 : vector<2x32xf32>, vector<2x32xf32>, vector<2x32xf32> -> vector<2x96xf32>
    %102 = tpu.concatenate %95, %96, %97 in 1 : vector<2x32xf32>, vector<2x32xf32>, vector<2x32xf32> -> vector<2x96xf32>
    %103 = tpu.concatenate %100, %101, %102 in 0 : vector<2x96xf32>, vector<2x96xf32>, vector<2x96xf32> -> vector<6x96xf32>
    %cst_14 = arith.constant dense<0.000000e+00> : vector<6x128xf32>
    %104 = tpu.matmul %103, %98, %cst_14 {dimension_numbers = #tpu.dot_dimension_numbers<[1], [0], [0], [1], [0, 0, 1, 1], [], []>} : vector<6x96xf32>, vector<96x128xf32>, vector<6x128xf32> -> vector<6x128xf32>
    %105 = vector.extract_strided_slice %104 {offsets = [0, 0], sizes = [2, 128], strides = [1, 1]} : vector<6x128xf32> to vector<2x128xf32>
    %106 = vector.extract_strided_slice %104 {offsets = [2, 0], sizes = [2, 128], strides = [1, 1]} : vector<6x128xf32> to vector<2x128xf32>
    %107 = vector.extract_strided_slice %104 {offsets = [4, 0], sizes = [2, 128], strides = [1, 1]} : vector<6x128xf32> to vector<2x128xf32>
    %c0_15 = arith.constant 0 : index
    %c0_16 = arith.constant 0 : index
    %108 = vector.load %arg6[%c0_15, %c0_16] : memref<256x16xf32, #tpu.memory_space<vmem>>, vector<256x16xf32>
    %109 = tpu.concatenate %105, %106 in 1 : vector<2x128xf32>, vector<2x128xf32> -> vector<2x256xf32>
    %110 = tpu.concatenate %106, %107 in 1 : vector<2x128xf32>, vector<2x128xf32> -> vector<2x256xf32>
    %111 = tpu.concatenate %109, %110 in 0 : vector<2x256xf32>, vector<2x256xf32> -> vector<4x256xf32>
    %cst_17 = arith.constant dense<0.000000e+00> : vector<4x16xf32>
    %112 = tpu.matmul %111, %108, %cst_17 {dimension_numbers = #tpu.dot_dimension_numbers<[1], [0], [0], [1], [0, 0, 1, 1], [], []>} : vector<4x256xf32>, vector<256x16xf32>, vector<4x16xf32> -> vector<4x16xf32>
    %113 = vector.extract_strided_slice %112 {offsets = [0, 0], sizes = [2, 16], strides = [1, 1]} : vector<4x16xf32> to vector<2x16xf32>
    %114 = vector.extract_strided_slice %112 {offsets = [2, 0], sizes = [2, 16], strides = [1, 1]} : vector<4x16xf32> to vector<2x16xf32>
    %115 = tpu.concatenate %113, %114 in 1 : vector<2x16xf32>, vector<2x16xf32> -> vector<2x32xf32>
    %c0_18 = arith.constant 0 : index
    %c0_19 = arith.constant 0 : index
    %116 = vector.load %arg7[%c0_18, %c0_19] : memref<2x32xf32, #tpu.memory_space<vmem>>, vector<2x32xf32>
    tpu.vector_store %arg7[%c0_18, %c0_19], %115 {strides = array<i32>} : memref<2x32xf32, #tpu.memory_space<vmem>>, vector<2x32xf32>,
    return
  }
  func.func @transform_0(%arg0: i32) -> (i32, i32, i32) {
    %c0_i32 = arith.constant 0 : i32
    %c0_i32_0 = arith.constant 0 : i32
    %c0_i32_1 = arith.constant 0 : i32
    return %arg0, %c0_i32, %c0_i32_0 : i32, i32, i32
  }
  func.func @transform_1(%arg0: i32) -> (i32, i32) {
    %c0_i32 = arith.constant 0 : i32
    %c0_i32_0 = arith.constant 0 : i32
    return %arg0, %c0_i32 : i32, i32
  }
  func.func @transform_2(%arg0: i32) -> (i32, i32) {
    %c0_i32 = arith.constant 0 : i32
    %c0_i32_0 = arith.constant 0 : i32
    %c0_i32_1 = arith.constant 0 : i32
    return %c0_i32, %c0_i32_0 : i32, i32
  }
  func.func @transform_3(%arg0: i32) -> (i32, i32) {
    %c0_i32 = arith.constant 0 : i32
    %c0_i32_0 = arith.constant 0 : i32
    %c0_i32_1 = arith.constant 0 : i32
    return %c0_i32, %c0_i32_0 : i32, i32
  }
  func.func @transform_4(%arg0: i32) -> (i32, i32) {
    %c0_i32 = arith.constant 0 : i32
    %c0_i32_0 = arith.constant 0 : i32
    %c0_i32_1 = arith.constant 0 : i32
    return %c0_i32, %c0_i32_0 : i32, i32
  }
  func.func @transform_5(%arg0: i32) -> (i32, i32) {
    %c0_i32 = arith.constant 0 : i32
    %c0_i32_0 = arith.constant 0 : i32
    %c0_i32_1 = arith.constant 0 : i32
    return %c0_i32, %c0_i32_0 : i32, i32
  }
  func.func @transform_6(%arg0: i32) -> (i32, i32) {
    %c0_i32 = arith.constant 0 : i32
    %c0_i32_0 = arith.constant 0 : i32
    return %arg0, %c0_i32 : i32, i32
  }
}

</mosaic_0001>

<bundles_post_ra>
// kernel: tpu_custom_call.1
= control target key start
LH: loop header
LB: loop body
LE: loop exit
PB: predicated region body
PF: predicated region fallthrough
CT: control target
= control target key end

     0   :  { %v43_v0 = vlaneseq  ;;  %v1039_v1 = vmov 1966171168   ;;  %s1615_s0 = inlined_call_operand.vmem [shape: f32[2,24,2], index: 0, kind: input, shape index: {}]   ;;  %s1616_s1 = inlined_call_operand.vmem [shape: f32[2,3], index: 1, kind: input, shape index: {}]   ;;  %s1617_s2 = inlined_call_operand.vmem [shape: f32[20,8], index: 2, kind: input, shape index: {}]   ;;  %s1618_s3 = inlined_call_operand.vmem [shape: f32[32,32], index: 3, kind: input, shape index: {}]   ;;  %s1619_s4 = inlined_call_operand.vmem [shape: f32[96,128], index: 4, kind: input, shape index: {}]   ;;  %s1620_s5 = inlined_call_operand.vmem [shape: f32[256,16], index: 5, kind: input, shape index: {}]   ;;  %s1621_s6 = inlined_call_operand.hbm [shape: f32[2,32], index: 6, kind: output, shape index: {}]  }
   0x1   :  { %v41_v2 = vunpack.c.l.s4 %v1039_v1  ;;  %v883_v3 = vld.sshfl [vmem:[%s1616_s1] sm:$0x11 pattern:$0x75316420] }
   0x2   :  { %v44_v4 = vshrl.u32 %v43_v0, 7  ;;  %v39_v6 = vcombine.high %v883_v3, %v883_v3 }
   0x3   :  { %v42_v5 = vunpack.c.0.s8 %v41_v2 }
   0x4   :  { %11 = vsyncpa [#allocation3], 0  ;;  %v56_v8 = vsub.s32 0, %v44_v4  ;;  %s1040_s23 = smov 2   ;;  %vm68_vm0 = vcmask 15360   ;;  %v25_v13 = vld [vmem:[%s1615_s0 + $0x8] sm:$0xff] }
   0x5   :  { %v45_v7 = vsub.s32 %v42_v5, %v44_v4  ;;  %v28_v16 = vld [vmem:[%s1615_s0 + $0x20] sm:$0xff]  ;;  %s1041_s27 = smov 5   ;;  %v29_v20 = vld [vmem:[%s1615_s0 + $0x28] sm:$0xff]  ;;  %v26_v22 = vld [vmem:[%s1615_s0 + $0x10] sm:$0xff]  ;;  %s1042_s8 = smov 10   ;;  %vm123_vm1 = vcmask 1044484  }
   0x6   :  { %s1043_s9 = smov 15   ;;  %vm103_vm2 = vcmask 1042434   ;;  %vm141_vm3 = vcmask 1046534   ;;  %v24_v38 = vld [vmem:[%s1615_s0] sm:$0xff]  ;;  %v27_v40 = vld [vmem:[%s1615_s0 + $0x18] sm:$0xff]  ;;  %vm81_vm4 = vcmask 1041409  }
   0x7   :  { %v46_v9 = vrot.slane %v883_v3, %v45_v7  ;;  %v53_v10 = vrot.slane %v39_v6, %v45_v7  ;;  %v77_v58 = vld [vmem:[%s1617_s2 + $0x10] sm:$0xf]  ;;  %v1044_v59 = vmov 0.0   ;;  %vm367_vm5 = vcmask 1043456   ;;  %v76_v61 = vld [vmem:[%s1617_s2 + $0x8] sm:$0xff]  ;;  %v75_v63 = vld [vmem:[%s1617_s2] sm:$0xff] }
   0x8   :  { %951 = vmatprep.subr.mxu0 %v1044_v59  ;;  %vm1045_vm6 = vmmov 0   ;;  %vm97_vm7 = vcmask 39936   ;;  %vm99_vm8 = vcmask 80896   ;;  %vm101_vm9 = vcmask 121856   ;;  %s1046_s2 = smov 8   ;;  %s1047_s19 = smov 16  }
   0x9   :  { %v57_v11 = vrot.slane %v46_v9, %v56_v8  ;;  %v61_v12 = vrot.slane %v53_v10, %v56_v8  ;;  %952 = vmatpush3.msk.msra.mxu0 %vm367_vm5, %v77_v58  ;;  %957 = vmatprep.mubr.msk.f32.mxu0 %vm1045_vm6, %v1044_v59  ;;  %vm365_vm10 = vcmask 1041408   ;;  %vm369_vm11 = vcmask 1045504   ;;  %s1048_s20 = smov 24   ;;  %s1049_s30 = smov 32  }
   0xa   :  { %953 = vmatprep.subr.mxu0 %v1044_v59  ;;  %vm377_vm12 = vcmask 162816   ;;  %vm336_vm13 = vcmask 1040384   ;;  %vm486_vm14 = vcmask 64512   ;;  %vm488_vm15 = vcmask 130048   ;;  %s1050_s12 = smov 64  }
   0xb   :  { %62 = vrot.lane.b32.xlu0 %v57_v11, %s1040_s23  ;;  %954 = vmatpush3.msra.mxu0 %v76_v61 }
   0xc   :  { %955 = vmatprep.subr.mxu0 %v1044_v59 }
   0xd   :  { %956 = vmatpush3.msra.mxu0 %v75_v63 }
   0xe   :  { %977 = vmatprep.subr.mxu0 %v1044_v59 }
   0xf   :  { %64 = vrot.lane.b32.xlu0 %v61_v12, %s1040_s23 }
  0x7d   :  { %v63_v14 = vpop.permute.xlu0 %62 }
  0x7e   :  { %v1094_v15 = vsel %vm68_vm0, %v25_v13, %v63_v14  ;;  %v71_v25 = vsel %vm68_vm0, %v26_v22, %v63_v14  ;;  %v1187_v41 = vsel %vm68_vm0, %v24_v38, %v63_v14 }
  0x7f   :  { %v1100_v17 = vrot.slane %v1094_v15, 1  ;;  %v1113_v21 = vrot.slane %v1094_v15, 2  ;;  %v1136_v27 = vrot.slane %v71_v25, 1  ;;  %v1144_v29 = vrot.slane %v1094_v15, 3 }
  0x80   :  { %v1181_v39 = vrot.slane %v71_v25, 2  ;;  %v1191_v42 = vrot.slane %v71_v25, 3  ;;  %v86_v45 = vrot.slane %v1187_v41, 1  ;;  %v114_v49 = vrot.slane %v1187_v41, 3 }
  0x81   :  { %v65_v18 = vpop.permute.xlu0 %64  ;;  %166 = vrot.lane.b32.xlu0 %v1100_v17, %s1041_s27  ;;  %v91_v52 = vrot.slane %v1187_v41, 2 }
  0x82   :  { %v1105_v19 = vsel %vm68_vm0, %v28_v16, %v65_v18  ;;  %v1121_v23 = vsel %vm68_vm0, %v29_v20, %v65_v18  ;;  %v72_v43 = vsel %vm68_vm0, %v27_v40, %v65_v18  ;;  %vm490_vm0 = vcmask 195584  }
  0x83   :  { %168 = vrot.lane.b32.xlu1 %v1105_v19, %s1041_s27  ;;  %v1126_v24 = vrot.slane %v1105_v19, 2  ;;  %v1132_v26 = vrot.slane %v1105_v19, 1  ;;  %v1139_v28 = vrot.slane %v1105_v19, 7  ;;  %v277_v30 = vrot.slane %v1121_v23, 7 }
  0x84   :  { %v1165_v34 = vrot.slane %v1121_v23, 1  ;;  %v1197_v44 = vrot.slane %v1121_v23, 2  ;;  %v126_v46 = vsel %vm123_vm1, %v72_v43, %v86_v45  ;;  %v115_v47 = vrot.slane %v72_v43, 2 }
  0x85   :  { %174 = vrot.lane.b32.xlu0 %v1113_v21, %s1042_s8  ;;  %v1150_v31 = vsel %vm103_vm2, %v1139_v28, %v1094_v15  ;;  %v1155_v32 = vsel %vm123_vm1, %v1139_v28, %v1094_v15  ;;  %v1160_v33 = vsel %vm141_vm3, %v1139_v28, %v1094_v15  ;;  %v1168_v35 = vsel %vm103_vm2, %v277_v30, %v71_v25 }
  0x86   :  { %v1171_v36 = vsel %vm141_vm3, %v277_v30, %v71_v25  ;;  %v1174_v37 = vsel %vm123_vm1, %v277_v30, %v71_v25  ;;  %v106_v48 = vsel %vm103_vm2, %v72_v43, %v86_v45  ;;  %v92_v50 = vrot.slane %v72_v43, 1 }
  0x87   :  { %253 = vrot.lane.b32.xlu1 %v1121_v23, %s1041_s27  ;;  %v116_v51 = vsel %vm103_vm2, %v115_v47, %v114_v49  ;;  %v1211_v54 = vrot.slane %v72_v43, 7  ;;  %v144_v55 = vsel %vm141_vm3, %v72_v43, %v86_v45  ;;  %v134_v57 = vsel %vm123_vm1, %v115_v47, %v114_v49 }
  0x88   :  { %v110_v53 = vsel %vm103_vm2, %v92_v50, %v91_v52  ;;  %v130_v60 = vsel %vm123_vm1, %v92_v50, %v91_v52  ;;  %v93_v62 = vsel %vm81_vm4, %v92_v50, %v91_v52  ;;  %v87_v0 = vsel %vm81_vm4, %v72_v43, %v86_v45 }
  0x89   :  { %182 = vrot.lane.b32.xlu0 %v1126_v24, %s1043_s9  ;;  %v82_v56 = vsel %vm81_vm4, %v1211_v54, %v1187_v41  ;;  %v195_v1 = vsel %vm103_vm2, %v1105_v19, %v1100_v17  ;;  %v148_v2 = vsel %vm141_vm3, %v92_v50, %v91_v52  ;;  %v212_v3 = vsel %vm123_vm1, %v1105_v19, %v1100_v17 }
  0x8a   :  { %v156_v4 = vsel %vm141_vm3, %v1126_v24, %v1144_v29  ;;  %v216_v5 = vsel %vm123_vm1, %v1132_v26, %v1113_v21  ;;  %v199_v6 = vsel %vm103_vm2, %v1132_v26, %v1113_v21  ;;  %v220_v7 = vsel %vm123_vm1, %v1126_v24, %v1144_v29 }
  0x8b   :  { %176 = vrot.lane.b32.xlu1 %v1132_v26, %s1042_s8  ;;  %v203_v8 = vsel %vm103_vm2, %v1126_v24, %v1144_v29  ;;  %v241_v9 = vsel %vm141_vm3, %v1197_v44, %v1191_v42  ;;  %v229_v10 = vsel %vm141_vm3, %v1105_v19, %v1100_v17  ;;  %v284_v11 = vsel %vm103_vm2, %v1165_v34, %v1181_v39 }
  0x8c   :  { %v233_v12 = vsel %vm141_vm3, %v1132_v26, %v1113_v21  ;;  %v288_v13 = vsel %vm103_vm2, %v1197_v44, %v1191_v42  ;;  %v280_v14 = vsel %vm103_vm2, %v1121_v23, %v1136_v27  ;;  %v314_v16 = vsel %vm141_vm3, %v1121_v23, %v1136_v27 }
  0x8d   :  { %251 = vrot.lane.b32.xlu0 %v1136_v27, %s1041_s27  ;;  %v297_v17 = vsel %vm123_vm1, %v1121_v23, %v1136_v27  ;;  %v318_v18 = vsel %vm141_vm3, %v1165_v34, %v1181_v39  ;;  %v301_v19 = vsel %vm123_vm1, %v1165_v34, %v1181_v39  ;;  %v305_v20 = vsel %vm123_vm1, %v1197_v44, %v1191_v42 }
  0x8e   :  { %v104_v47 = vsel %vm103_vm2, %v1211_v54, %v1187_v41  ;;  %v124_v50 = vsel %vm123_vm1, %v1211_v54, %v1187_v41  ;;  %vm552_vm1 = vcmask 261120   ;;  %vm655_vm2 = vcmask 523264  }
  0x8f   :  { %180 = vrot.lane.b32.xlu1 %v1144_v29, %s1043_s9  ;;  %vm867_vm4 = vcmask 254976  }
  0x91   :  { %261 = vrot.lane.b32.xlu0 %v1165_v34, %s1042_s8 }
  0x93   :  { %259 = vrot.lane.b32.xlu1 %v1181_v39, %s1042_s8 }
  0x95   :  { %265 = vrot.lane.b32.xlu0 %v1191_v42, %s1043_s9 }
  0x97   :  { %267 = vrot.lane.b32.xlu1 %v1197_v44, %s1043_s9 }
  0x99   :  { %127 = vrot.lane.b32.xlu0 %v126_v46, %s1041_s27 }
  0x9b   :  { %107 = vrot.lane.b32.xlu1 %v106_v48, %s1041_s27 }
  0x9d   :  { %117 = vrot.lane.b32.xlu0 %v116_v51, %s1043_s9 }
  0x9f   :  { %111 = vrot.lane.b32.xlu1 %v110_v53, %s1042_s8 }
  0xa1   :  { %145 = vrot.lane.b32.xlu0 %v144_v55, %s1041_s27 }
  0xa3   :  { %83 = vrot.lane.b32.xlu1 %v82_v56, %s1041_s27 }
  0xa5   :  { %135 = vrot.lane.b32.xlu0 %v134_v57, %s1043_s9 }
  0xa7   :  { %131 = vrot.lane.b32.xlu1 %v130_v60, %s1042_s8 }
  0xa9   :  { %94 = vrot.lane.b32.xlu0 %v93_v62, %s1043_s9 }
  0xab   :  { %88 = vrot.lane.b32.xlu1 %v87_v0, %s1042_s8 }
  0xad   :  { %196 = vrot.lane.b32.xlu0 %v195_v1, %s1041_s27 }
  0xaf   :  { %149 = vrot.lane.b32.xlu1 %v148_v2, %s1042_s8 }
  0xb1   :  { %213 = vrot.lane.b32.xlu0 %v212_v3, %s1041_s27 }
  0xb3   :  { %157 = vrot.lane.b32.xlu1 %v156_v4, %s1043_s9 }
  0xb5   :  { %217 = vrot.lane.b32.xlu0 %v216_v5, %s1042_s8 }
  0xb7   :  { %200 = vrot.lane.b32.xlu1 %v199_v6, %s1042_s8  ;;  %v142_v6 = vsel %vm141_vm3, %v1211_v54, %v1187_v41  ;;  %vm682_vm3 = vcmask 785408  }
  0xb9   :  { %221 = vrot.lane.b32.xlu0 %v220_v7, %s1043_s9 }
  0xbb   :  { %204 = vrot.lane.b32.xlu1 %v203_v8, %s1043_s9 }
  0xbd   :  { %242 = vrot.lane.b32.xlu0 %v241_v9, %s1043_s9 }
  0xbf   :  { %230 = vrot.lane.b32.xlu1 %v229_v10, %s1041_s27 }
  0xc1   :  { %285 = vrot.lane.b32.xlu0 %v284_v11, %s1042_s8 }
  0xc3   :  { %234 = vrot.lane.b32.xlu1 %v233_v12, %s1042_s8 }
  0xc5   :  { %289 = vrot.lane.b32.xlu0 %v288_v13, %s1043_s9 }
  0xc7   :  { %281 = vrot.lane.b32.xlu1 %v280_v14, %s1041_s27 }
  0xc9   :  { %315 = vrot.lane.b32.xlu0 %v314_v16, %s1041_s27 }
  0xcb   :  { %298 = vrot.lane.b32.xlu1 %v297_v17, %s1041_s27 }
  0xcd   :  { %319 = vrot.lane.b32.xlu0 %v318_v18, %s1042_s8 }
  0xcf   :  { %302 = vrot.lane.b32.xlu1 %v301_v19, %s1042_s8 }
  0xd3   :  { %306 = vrot.lane.b32.xlu1 %v305_v20, %s1043_s9  ;;  %s1051_s9 = smov [#allocation2]  }
  0xd4   :  { %s875_s10 = sshll.u32 %s1051_s9, 4  ;;  %s876_s10 = int_to_ptr.vmem [resolvable:$true] %s875_s10 }
  0xd5   :  { %p1022_p1 = scmp.lt.s32.totalorder %s876_s10, %s876_s10 }
  0xf3   :  { %v167_v21 = vpop.permute.xlu0 %166 }
  0xf4   :  { %v186_v12 = vsel %vm97_vm7, %v1187_v41, %v167_v21 }
  0xf5   :  { %v169_v22 = vpop.permute.xlu1 %168 }
  0xf6   :  { %v187_v13 = vsel %vm97_vm7, %v1211_v54, %v169_v22 }
  0xf7   :  { %v175_v23 = vpop.permute.xlu0 %174 }
  0xf8   :  { %v188_v17 = vsel %vm99_vm8, %v186_v12, %v175_v23 }
  0xf9   :  { %v254_v24 = vpop.permute.xlu1 %253 }
  0xfa   :  { %v1320_v25 = vsel %vm97_vm7, %v1139_v28, %v254_v24 }
  0xfb   :  { %v183_v26 = vpop.permute.xlu0 %182 }
  0xfd   :  { %v177_v27 = vpop.permute.xlu1 %176 }
  0xfe   :  { %v189_v18 = vsel %vm99_vm8, %v187_v13, %v177_v27 }
  0xff   :  { %v1322_v29 = vpop.permute.xlu0 %251 }
 0x101   :  { %v181_v30 = vpop.permute.xlu1 %180 }
 0x102   :  { %v190_v19 = vsel %vm101_vm9, %v188_v17, %v181_v30 }
 0x103   :  { %v1324_v34 = vpop.permute.xlu0 %261  ;;  %v337_v21 = vrot.slane %v190_v19, 7 }
 0x105   :  { %v1326_v38 = vpop.permute.xlu1 %259 }
 0x107   :  { %v1328_v39 = vpop.permute.xlu0 %265 }
 0x109   :  { %v1330_v40 = vpop.permute.xlu1 %267 }
 0x10b   :  { %v128_v42 = vpop.permute.xlu0 %127 }
 0x10c   :  { %v138_v52 = vsel %vm97_vm7, %v124_v50, %v128_v42  ;;  %v191_v42 = vsel %vm101_vm9, %v189_v18, %v183_v26  ;;  %v271_v50 = vsel %vm97_vm7, %v1094_v15, %v1322_v29 }
 0x10d   :  { %v108_v43 = vpop.permute.xlu1 %107  ;;  %v338_v26 = vrot.slane %v191_v42, 7 }
 0x10e   :  { %v120_v48 = vsel %vm97_vm7, %v104_v47, %v108_v43 }
 0x10f   :  { %v118_v44 = vpop.permute.xlu0 %117 }
 0x111   :  { %v112_v45 = vpop.permute.xlu1 %111 }
 0x112   :  { %v121_v51 = vsel %vm99_vm8, %v120_v48, %v112_v45 }
 0x113   :  { %v146_v46 = vpop.permute.xlu0 %145  ;;  %v122_v56 = vsel %vm101_vm9, %v121_v51, %v118_v44 }
 0x114   :  { %v326_v62 = vrot.slane %v122_v56, 7  ;;  %v160_v8 = vsel %vm97_vm7, %v142_v6, %v146_v46  ;;  %v339_v46 = vsel %vm336_vm13, %v337_v21, %v338_v26  ;;  %v471_v21 = vld [vmem:[%s1618_s3 + $0x8] sm:$0xff] }
 0x115   :  { %v84_v28 = vpop.permute.xlu1 %83 }
 0x116   :  { %v98_v60 = vsel %vm97_vm7, 0.0, %v84_v28 }
 0x117   :  { %v136_v49 = vpop.permute.xlu0 %135 }
 0x119   :  { %v132_v53 = vpop.permute.xlu1 %131 }
 0x11a   :  { %v139_v55 = vsel %vm99_vm8, %v138_v52, %v132_v53  ;;  %v274_v53 = vsel %vm99_vm8, %v1320_v25, %v1324_v34 }
 0x11b   :  { %v95_v57 = vpop.permute.xlu0 %94  ;;  %v140_v58 = vsel %vm101_vm9, %v139_v55, %v136_v49  ;;  %v273_v55 = vsel %vm99_vm8, %v271_v50, %v1326_v38 }
 0x11c   :  { %v329_v0 = vrot.slane %v140_v58, 7 }
 0x11d   :  { %v89_v61 = vpop.permute.xlu1 %88 }
 0x11e   :  { %v100_v63 = vsel %vm99_vm8, %v98_v60, %v89_v61 }
 0x11f   :  { %v102_v1 = vsel %vm101_vm9, %v100_v63, %v95_v57  ;;  %v197_v2 = vpop.permute.xlu0 %196  ;;  %v276_v57 = vsel %vm101_vm9, %v274_v53, %v1330_v40 }
 0x120   :  { %v366_v3 = vsel %vm365_vm10, %v102_v1, %v326_v62  ;;  %v207_v22 = vsel %vm97_vm7, %v1150_v31, %v197_v2  ;;  %v353_v61 = vrot.slane %v276_v57, 7 }
 0x121   :  { %v150_v4 = vpop.permute.xlu1 %149  ;;  %v368_v5 = vsel %vm367_vm5, %v366_v3, %v329_v0 }
 0x122   :  { %v161_v9 = vsel %vm99_vm8, %v160_v8, %v150_v4 }
 0x123   :  { %v214_v7 = vpop.permute.xlu0 %213 }
 0x124   :  { %v224_v41 = vsel %vm97_vm7, %v1155_v32, %v214_v7 }
 0x125   :  { %v158_v10 = vpop.permute.xlu1 %157 }
 0x126   :  { %v162_v11 = vsel %vm101_vm9, %v161_v9, %v158_v10 }
 0x127   :  { %v332_v14 = vrot.slane %v162_v11, 7  ;;  %v218_v16 = vpop.permute.xlu0 %217 }
 0x128   :  { %v225_v23 = vsel %vm99_vm8, %v224_v41, %v218_v16  ;;  %v473_v41 = vld [vmem:[%s1618_s3 + $0x18] sm:$0xff] }
 0x129   :  { %v201_v20 = vpop.permute.xlu1 %200  ;;  %v370_v24 = vsel %vm369_vm11, %v368_v5, %v332_v14  ;;  %966 = vmatprep.subr.mxu1 %v473_v41 }
 0x12a   :  { %958 = vmatmul.mubr.msk.f32.vlgmr.msra.gmra.mxu0 %vm377_vm12, %v370_v24  ;;  %v208_v27 = vsel %vm99_vm8, %v207_v22, %v201_v20  ;;  %967 = vmatpush3.msra.mxu1 %v473_v41  ;;  %v470_v22 = vld [vmem:[%s1618_s3] sm:$0xff]  ;;  %v770_v41 = vld [vmem:[%s1620_s5 + $0x70] sm:$0xff] }
 0x12b   :  { %v222_v54 = vpop.permute.xlu0 %221  ;;  %960 = vmatprep.mubr.msk.f32.mxu0 %vm1045_vm6, %v1044_v59 }
 0x12c   :  { %v226_v30 = vsel %vm101_vm9, %v225_v23, %v222_v54  ;;  %v472_v54 = vld [vmem:[%s1618_s3 + $0x10] sm:$0xff] }
 0x12d   :  { %v205_v43 = vpop.permute.xlu1 %204  ;;  %v345_v28 = vrot.slane %v226_v30, 7  ;;  %968 = vmatprep.subr.mxu1 %v472_v54 }
 0x12e   :  { %v209_v44 = vsel %vm101_vm9, %v208_v27, %v205_v43  ;;  %969 = vmatpush3.msra.mxu1 %v472_v54 }
 0x12f   :  { %v342_v32 = vrot.slane %v209_v44, 7  ;;  %v243_v45 = vpop.permute.xlu0 %242  ;;  %970 = vmatprep.subr.mxu1 %v471_v21 }
 0x130   :  { %971 = vmatpush3.msra.mxu1 %v471_v21 }
 0x131   :  { %v371_v47 = vsel %vm365_vm10, %v339_v46, %v342_v32  ;;  %v231_v48 = vpop.permute.xlu1 %230  ;;  %972 = vmatprep.subr.mxu1 %v470_v22 }
 0x132   :  { %v372_v31 = vsel %vm367_vm5, %v371_v47, %v345_v28  ;;  %v245_v51 = vsel %vm97_vm7, %v1160_v33, %v231_v48  ;;  %v275_v33 = vsel %vm101_vm9, %v273_v55, %v1328_v39  ;;  %973 = vmatpush3.msra.mxu1 %v470_v22  ;;  %v769_v22 = vld [vmem:[%s1620_s5 + $0x68] sm:$0xff] }
 0x133   :  { %v286_v49 = vpop.permute.xlu0 %285  ;;  %v352_v40 = vrot.slane %v275_v33, 7 }
 0x135   :  { %v235_v52 = vpop.permute.xlu1 %234  ;;  %v354_v1 = vsel %vm336_vm13, %v352_v40, %v353_v61 }
 0x136   :  { %v246_v56 = vsel %vm99_vm8, %v245_v51, %v235_v52 }
 0x137   :  { %v247_v58 = vsel %vm101_vm9, %v246_v56, %v243_v45  ;;  %v290_v60 = vpop.permute.xlu0 %289 }
 0x138   :  { %v348_v15 = vrot.slane %v247_v58, 7 }
 0x139   :  { %v282_v29 = vpop.permute.xlu1 %281 }
 0x13a   :  { %v292_v25 = vsel %vm97_vm7, %v1168_v35, %v282_v29  ;;  %v373_v34 = vsel %vm369_vm11, %v372_v31, %v348_v15 }
 0x13b   :  { %v293_v38 = vsel %vm99_vm8, %v292_v25, %v286_v49  ;;  %v316_v62 = vpop.permute.xlu0 %315  ;;  %961 = vmatmul.mubr.msk.f32.gmra.mxu0 %vm377_vm12, %v373_v34 }
 0x13c   :  { %v294_v63 = vsel %vm101_vm9, %v293_v38, %v290_v60  ;;  %963 = vmatprep.mubr.msk.f32.mxu0 %vm1045_vm6, %v1044_v59  ;;  %v322_v3 = vsel %vm97_vm7, %v1171_v36, %v316_v62 }
 0x13d   :  { %v357_v0 = vrot.slane %v294_v63, 7  ;;  %v299_v39 = vpop.permute.xlu1 %298 }
 0x13e   :  { %v309_v6 = vsel %vm97_vm7, %v1174_v37, %v299_v39 }
 0x13f   :  { %v320_v2 = vpop.permute.xlu0 %319  ;;  %v374_v35 = vsel %vm365_vm10, %v354_v1, %v357_v0 }
 0x140   :  { %v323_v5 = vsel %vm99_vm8, %v322_v3, %v320_v2 }
 0x141   :  { %v303_v4 = vpop.permute.xlu1 %302  ;;  %v324_v7 = vsel %vm101_vm9, %v323_v5, 0.0 }
 0x142   :  { %v310_v8 = vsel %vm99_vm8, %v309_v6, %v303_v4  ;;  %v363_v12 = vrot.slane %v324_v7, 7  ;;  %v645_v6 = vld [vmem:[%s1619_s4 + $0x58] sm:$0xff]  ;;  %v644_v7 = vld [vmem:[%s1619_s4 + $0x50] sm:$0xff] }
 0x143   :  { %978 = vmatpush3.msra.mxu0 %v645_v6  ;;  %v756_v6 = vld [vmem:[%s1620_s5] sm:$0xff] }
 0x144   :  { %979 = vmatprep.subr.mxu0 %v1044_v59 }
 0x145   :  { %v307_v9 = vpop.permute.xlu1 %306  ;;  %980 = vmatpush3.msra.mxu0 %v644_v7 }
 0x146   :  { %v311_v10 = vsel %vm101_vm9, %v310_v8, %v307_v9  ;;  %v643_v8 = vld [vmem:[%s1619_s4 + $0x48] sm:$0xff]  ;;  %981 = vmatprep.subr.mxu0 %v1044_v59  ;;  %v642_v9 = vld [vmem:[%s1619_s4 + $0x40] sm:$0xff] }
 0x147   :  { %v360_v11 = vrot.slane %v311_v10, 7  ;;  %982 = vmatpush3.msra.mxu0 %v643_v8  ;;  %v641_v10 = vld [vmem:[%s1619_s4 + $0x38] sm:$0xff] }
 0x148   :  { %983 = vmatprep.subr.mxu0 %v1044_v59 }
 0x149   :  { %v375_v13 = vsel %vm367_vm5, %v374_v35, %v360_v11  ;;  %984 = vmatpush3.msra.mxu0 %v642_v9  ;;  %v640_v11 = vld [vmem:[%s1619_s4 + $0x30] sm:$0xff] }
 0x14a   :  { %v376_v14 = vsel %vm369_vm11, %v375_v13, %v363_v12  ;;  %985 = vmatprep.subr.mxu0 %v1044_v59  ;;  %v639_v12 = vld [vmem:[%s1619_s4 + $0x28] sm:$0xff]  ;;  %v638_v13 = vld [vmem:[%s1619_s4 + $0x20] sm:$0xff] }
 0x14b   :  { %964 = vmatmul.mubr.msk.f32.gmra.mxu0 %vm377_vm12, %v376_v14  ;;  %v637_v14 = vld [vmem:[%s1619_s4 + $0x18] sm:$0xff] }
 0x14c   :  { %1001 = vmatprep.mubr.msk.f32.mxu0 %vm1045_vm6, %v1044_v59  ;;  %986 = vmatpush3.msra.mxu0 %v641_v10 }
 0x14d   :  { %987 = vmatprep.subr.mxu0 %v1044_v59 }
 0x14e   :  { %988 = vmatpush3.msra.mxu0 %v640_v11 }
 0x14f   :  { %989 = vmatprep.subr.mxu0 %v1044_v59 }
 0x150   :  { %990 = vmatpush3.msra.mxu0 %v639_v12 }
 0x151   :  { %991 = vmatprep.subr.mxu0 %v1044_v59 }
 0x152   :  { %992 = vmatpush3.msra.mxu0 %v638_v13 }
 0x153   :  { %993 = vmatprep.subr.mxu0 %v1044_v59 }
 0x154   :  { %994 = vmatpush3.msra.mxu0 %v637_v14 }
 0x155   :  { %995 = vmatprep.subr.mxu0 %v1044_v59 }
 0x1ea   :  { %v456_v36 = vpop.f32.mrf.mxu0 }
 0x1eb   :  { %475 = vrot.lane.b32.xlu0 %v456_v36, %s1046_s2  ;;  %v478_v37 = vrot.slane %v456_v36, 2  ;;  %v482_v17 = vrot.slane %v456_v36, 4 }
 0x1ec   :  { %v959_v16 = vpop.f32.mrf.mxu0 }
 0x1ed   :  { %492 = vrot.lane.b32.xlu1 %v478_v37, %s1046_s2  ;;  %v635_v16 = vld [vmem:[%s1619_s4 + $0x8] sm:$0xff] }
 0x1ef   :  { %495 = vrot.lane.b32.xlu0 %v482_v17, %s1047_s19 }
 0x1f1   :  { %479 = vrot.lane.b32.xlu1 %v478_v37, %s1047_s19 }
 0x1f5   :  { %483 = vrot.lane.b32.xlu1 %v482_v17, %s1048_s20 }
 0x1fb   :  { %v461_v18 = vpop.f32.mrf.mxu0 }
 0x1fc   :  { %v510_v19 = vrot.slane %v461_v18, 4  ;;  %v506_v20 = vrot.slane %v461_v18, 2  ;;  %v499_v42 = vrot.slane %v461_v18, 6 }
 0x1fd   :  { %v962_v24 = vpop.f32.mrf.mxu0 }
 0x1fe   :  { %511 = vrot.lane.b32.xlu0 %v510_v19, %s1047_s19  ;;  %507 = vrot.lane.b32.xlu1 %v506_v20, %s1046_s2  ;;  %v787_v19 = vld [vmem:[%s1620_s5 + $0xf8] sm:$0xff] }
 0x1ff   :  { %v771_v20 = vld [vmem:[%s1620_s5 + $0x78] sm:$0xff]  ;;  %916 = vmatprep.subr.mxu1 %v787_v19 }
 0x202   :  { %500 = vrot.lane.b32.xlu1 %v499_v42, %s1048_s20  ;;  %v786_v42 = vld [vmem:[%s1620_s5 + $0xf0] sm:$0xff] }
 0x20b   :  { %v466_v23 = vpop.f32.mrf.mxu0 }
 0x20c   :  { %v529_v27 = vrot.slane %v466_v23, 4  ;;  %v525_v30 = vrot.slane %v466_v23, 2  ;;  %v518_v26 = vrot.slane %v466_v23, 6 }
 0x20d   :  { %v965_v43 = vpop.f32.mrf.mxu0 }
 0x20e   :  { %530 = vrot.lane.b32.xlu1 %v529_v27, %s1047_s19  ;;  %526 = vrot.lane.b32.xlu0 %v525_v30, %s1046_s2  ;;  %v768_v30 = vld [vmem:[%s1620_s5 + $0x60] sm:$0xff]  ;;  %v783_v43 = vld [vmem:[%s1620_s5 + $0xd8] sm:$0xff] }
 0x212   :  { %519 = vrot.lane.b32.xlu0 %v518_v26, %s1048_s20  ;;  %v767_v26 = vld [vmem:[%s1620_s5 + $0x58] sm:$0xff] }
 0x25d   :  { %v476_v45 = vpop.permute.xlu0 %475 }
 0x25e   :  { %v487_v52 = vsel %vm486_vm14, 0.0, %v476_v45  ;;  %v781_v45 = vld [vmem:[%s1620_s5 + $0xc8] sm:$0xff] }
 0x25f   :  { %v493_v44 = vpop.permute.xlu1 %492 }
 0x260   :  { %v503_v49 = vsel %vm486_vm14, %v456_v36, %v493_v44  ;;  %v782_v44 = vld [vmem:[%s1620_s5 + $0xd0] sm:$0xff] }
 0x261   :  { %v496_v47 = vpop.permute.xlu0 %495 }
 0x262   :  { %v504_v53 = vsel %vm488_vm15, %v503_v49, %v496_v47  ;;  %v764_v47 = vld [vmem:[%s1620_s5 + $0x40] sm:$0xff]  ;;  %v778_v49 = vld [vmem:[%s1620_s5 + $0xb0] sm:$0xff] }
 0x263   :  { %v480_v32 = vpop.permute.xlu1 %479 }
 0x264   :  { %v489_v29 = vsel %vm488_vm15, %v487_v52, %v480_v32  ;;  %v766_v32 = vld [vmem:[%s1620_s5 + $0x50] sm:$0xff]  ;;  %v761_v52 = vld [vmem:[%s1620_s5 + $0x28] sm:$0xff] }
 0x267   :  { %v484_v46 = vpop.permute.xlu1 %483 }
 0x268   :  { %v491_v61 = vsel %vm490_vm0, %v489_v29, %v484_v46  ;;  %v765_v46 = vld [vmem:[%s1620_s5 + $0x48] sm:$0xff] }
 0x270   :  { %v508_v28 = vpop.permute.xlu1 %507  ;;  %v512_v48 = vpop.permute.xlu0 %511 }
 0x271   :  { %v514_v31 = vsel %vm486_vm14, %v456_v36, %v508_v28  ;;  %v522_v57 = vsel %vm486_vm14, %v461_v18, %v508_v28  ;;  %v636_v36 = vld [vmem:[%s1619_s4 + $0x10] sm:$0xff]  ;;  %v780_v28 = vld [vmem:[%s1620_s5 + $0xc0] sm:$0xff] }
 0x272   :  { %v515_v51 = vsel %vm488_vm15, %v514_v31, %v512_v48  ;;  %v523_v63 = vsel %vm488_vm15, %v522_v57, %v512_v48  ;;  %996 = vmatpush3.msra.mxu0 %v636_v36  ;;  %v779_v48 = vld [vmem:[%s1620_s5 + $0xb8] sm:$0xff] }
 0x273   :  { %997 = vmatprep.subr.mxu0 %v1044_v59  ;;  %v763_v31 = vld [vmem:[%s1620_s5 + $0x38] sm:$0xff] }
 0x274   :  { %v501_v50 = vpop.permute.xlu1 %500  ;;  %998 = vmatpush3.msra.mxu0 %v635_v16  ;;  %v759_v57 = vld [vmem:[%s1620_s5 + $0x18] sm:$0xff] }
 0x275   :  { %v516_v55 = vsel %vm490_vm0, %v515_v51, %v501_v50  ;;  %v505_v58 = vsel %vm490_vm0, %v504_v53, %v501_v50  ;;  %999 = vmatprep.subr.mxu0 %v1044_v59  ;;  %v785_v59 = vld [vmem:[%s1620_s5 + $0xe8] sm:$0xff]  ;;  %v762_v50 = vld [vmem:[%s1620_s5 + $0x30] sm:$0xff]  ;;  %v776_v53 = vld [vmem:[%s1620_s5 + $0xa0] sm:$0xff] }
 0x276   :  { %v540_v25 = vrot.slane %v516_v55, 2  ;;  %v548_v34 = vsel %vm365_vm10, %v491_v61, %v505_v58  ;;  %v777_v51 = vld [vmem:[%s1620_s5 + $0xa8] sm:$0xff]  ;;  %v760_v55 = vld [vmem:[%s1620_s5 + $0x20] sm:$0xff]  ;;  %v774_v58 = vld [vmem:[%s1620_s5 + $0x90] sm:$0xff] }
 0x278   :  { %v549_v3 = vsel %vm367_vm5, %v548_v34, %v540_v25 }
 0x280   :  { %v527_v56 = vpop.permute.xlu0 %526  ;;  %v531_v33 = vpop.permute.xlu1 %530 }
 0x281   :  { %v533_v60 = vsel %vm486_vm14, %v461_v18, %v527_v56  ;;  %v536_v15 = vsel %vm486_vm14, %v466_v23, %v527_v56  ;;  %v634_v18 = vld [vmem:[%s1619_s4] sm:$0xff]  ;;  %v775_v56 = vld [vmem:[%s1620_s5 + $0x98] sm:$0xff] }
 0x282   :  { %v534_v38 = vsel %vm488_vm15, %v533_v60, %v531_v33  ;;  %v537_v62 = vsel %vm488_vm15, %v536_v15, %v531_v33  ;;  %1000 = vmatpush3.msra.mxu0 %v634_v18  ;;  %v784_v23 = vld [vmem:[%s1620_s5 + $0xe0] sm:$0xff]  ;;  %v758_v60 = vld [vmem:[%s1620_s5 + $0x10] sm:$0xff] }
 0x283   :  { %v538_v35 = vsel %vm490_vm0, %v537_v62, 0.0 }
 0x284   :  { %v520_v40 = vpop.permute.xlu0 %519 }
 0x285   :  { %v524_v0 = vsel %vm490_vm0, %v523_v63, %v520_v40  ;;  %v535_v39 = vsel %vm490_vm0, %v534_v38, %v520_v40 }
 0x286   :  { %v543_v1 = vrot.slane %v524_v0, 4  ;;  %v546_v2 = vrot.slane %v535_v39, 6 }
 0x288   :  { %v550_v4 = vsel %vm369_vm11, %v549_v3, %v543_v1  ;;  %v551_v5 = vsel %vm365_vm10, %v546_v2, %v538_v35  ;;  %v773_v3 = vld [vmem:[%s1620_s5 + $0x88] sm:$0xff] }
 0x289   :  { %974 = vmatprep.mubr.msk.f32.mxu1 %vm552_vm1, %v550_v4  ;;  %v757_v4 = vld [vmem:[%s1620_s5 + $0x8] sm:$0xff] }
 0x28a   :  { %975 = vmatmul.mubr.msk.f32.vlgmr.msra.gmra.mxu1 %vm552_vm1, %v551_v5  ;;  %v772_v5 = vld [vmem:[%s1620_s5 + $0x80] sm:$0xff]  ;;  %s1017_s5 = scalar_lea.vmem %s876_s10, 32 }
 0x28b   :  { %917 = vmatpush3.msra.mxu1 %v771_v20  ;;  %p1018_p0 = scmp.ne.s32.totalorder %s876_s10, %s1017_s5  ;;  %p1023_p2 = scmp.lt.s32.totalorder %s1017_s5, %s1017_s5 }
 0x28c   :  { %918 = vmatprep.subr.mxu1 %v786_v42 }
 0x28d   :  { %919 = vmatpush3.msra.mxu1 %v770_v41  ;;  %p1024_p3 = por %p1023_p2, %p1022_p1 }
 0x28e   :  { %920 = vmatprep.subr.mxu1 %v785_v59 }
 0x28f   :  { %921 = vmatpush3.msra.mxu1 %v769_v22  ;;  %p1025_p4 = pnand %p1024_p3, %p1018_p0 }
 0x290   :  { %922 = vmatprep.subr.mxu1 %v784_v23 }
 0x291   :  { %923 = vmatpush3.msra.mxu1 %v768_v30 }
 0x292   :  { %924 = vmatprep.subr.mxu1 %v783_v43 }
 0x293   :  { %925 = vmatpush3.msra.mxu1 %v767_v26 }
 0x294   :  { %926 = vmatprep.subr.mxu1 %v782_v44 }
 0x295   :  { %927 = vmatpush3.msra.mxu1 %v766_v32 }
 0x296   :  { %928 = vmatprep.subr.mxu1 %v781_v45 }
 0x297   :  { %929 = vmatpush3.msra.mxu1 %v765_v46 }
 0x298   :  { %930 = vmatprep.subr.mxu1 %v780_v28 }
 0x299   :  { %931 = vmatpush3.msra.mxu1 %v764_v47 }
 0x29a   :  { %932 = vmatprep.subr.mxu1 %v779_v48 }
 0x29b   :  { %933 = vmatpush3.msra.mxu1 %v763_v31 }
 0x29c   :  { %934 = vmatprep.subr.mxu1 %v778_v49 }
 0x29d   :  { %935 = vmatpush3.msra.mxu1 %v762_v50 }
 0x29e   :  { %936 = vmatprep.subr.mxu1 %v777_v51 }
 0x29f   :  { %937 = vmatpush3.msra.mxu1 %v761_v52 }
 0x2a0   :  { %938 = vmatprep.subr.mxu1 %v776_v53 }
 0x2a1   :  { %939 = vmatpush3.msra.mxu1 %v760_v55 }
 0x2a2   :  { %940 = vmatprep.subr.mxu1 %v775_v56 }
 0x2a3   :  { %941 = vmatpush3.msra.mxu1 %v759_v57 }
 0x2a4   :  { %942 = vmatprep.subr.mxu1 %v774_v58 }
 0x2a5   :  { %943 = vmatpush3.msra.mxu1 %v758_v60 }
 0x2a6   :  { %944 = vmatprep.subr.mxu1 %v773_v3 }
 0x2a7   :  { %945 = vmatpush3.msra.mxu1 %v757_v4 }
 0x2a8   :  { %946 = vmatprep.subr.mxu1 %v772_v5 }
 0x2a9   :  { %947 = vmatpush3.msra.mxu1 %v756_v6 }
 0x34a   :  { %v976_v37 = vpop.f32.mrf.mxu1 }
 0x34b   :  { %v667_v17 = vrot.slane %v976_v37, 2  ;;  %v671_v54 = vrot.slane %v976_v37, 4 }
 0x34c   :  { %v1507_v24 = vpop.f32.mrf.mxu1 }
 0x34d   :  { %668 = vrot.lane.b32.xlu0 %v667_v17, %s1049_s30  ;;  %647 = vrot.lane.b32.xlu1 %v1507_v24, %s1049_s30  ;;  %v650_v21 = vrot.slane %v1507_v24, 2  ;;  %v660_v27 = vrot.slane %v1507_v24, 4 }
 0x351   :  { %672 = vrot.lane.b32.xlu1 %v671_v54, %s1050_s12  ;;  %657 = vrot.lane.b32.xlu0 %v650_v21, %s1049_s30 }
 0x355   :  { %661 = vrot.lane.b32.xlu1 %v660_v27, %s1050_s12  ;;  %651 = vrot.lane.b32.xlu0 %v650_v21, %s1050_s12 }
 0x3bf   :  { %v669_v15 = vpop.permute.xlu0 %668  ;;  %v648_v33 = vpop.permute.xlu1 %647 }
 0x3c0   :  { %v675_v25 = vsel %vm552_vm1, %v1507_v24, %v669_v15  ;;  %v654_v38 = vsel %vm552_vm1, 0.0, %v648_v33 }
 0x3c3   :  { %v673_v29 = vpop.permute.xlu1 %672  ;;  %v658_v61 = vpop.permute.xlu0 %657 }
 0x3c4   :  { %v676_v34 = vsel %vm655_vm2, %v675_v25, %v673_v29  ;;  %v664_v62 = vsel %vm552_vm1, %v1507_v24, %v658_v61 }
 0x3c5   :  { %v678_v0 = vrot.slane %v676_v34, 2 }
 0x3c7   :  { %v662_v40 = vpop.permute.xlu1 %661  ;;  %v652_v63 = vpop.permute.xlu0 %651 }
 0x3c8   :  { %v665_v39 = vsel %vm655_vm2, %v664_v62, %v662_v40  ;;  %v656_v1 = vsel %vm655_vm2, %v654_v38, %v652_v63 }
 0x3c9   :  { %v680_v2 = vsel %vm365_vm10, %v656_v1, %v665_v39 }
 0x3ca   :  { %v681_v35 = vsel %vm367_vm5, %v680_v2, %v678_v0 }
 0x3cb   :  { %1002 = vmatmul.mubr.msk.f32.vlgmr.msra.gmra.mxu0 %vm682_vm3, %v681_v35 }
 0x48b   :  { %v752_v7 = vpop.f32.mrf.mxu0 }
 0x48c   :  { %v789_v8 = vrot.slane %v752_v7, 2 }
 0x48d   :  { %v1003_v9 = vpop.f32.mrf.mxu0 }
 0x48e   :  { %855 = vmatprep.mubr.f32.mxu1 %v789_v8 }
 0x48f   :  { %856 = vmatmul.mubr.f32.vlgmr.msra.gmra.mxu1 %v752_v7 }
 0x54f   :  { %v948_v10 = vpop.f32.mrf.mxu1 }
 0x551   :  { %v949_v11 = vpop.f32.mrf.mxu1 }
 0x552   :  { %v950_v12 = vadd.f32 %v949_v11, %v948_v10 }
 0x554   :  { %v862_v13 = vrot.slane %v950_v12, 2 }
 0x556   :  { %863 = vrot.lane.b32.xlu0 %v862_v13, %s1047_s19 }
 0x5c8   :  { %v864_v14 = vpop.permute.xlu0 %863 }
 0x5c9   :  { %v866_v36 = vsel %vm488_vm15, %v950_v12, %v864_v14 }
 0x5ca   :  { %868 = vst.msk [vmem:[#allocation2] sm:$0x3] %vm867_vm4, %v866_v36 }
 0x5cb   :  { %1028 = shalt.err (!%p1025_p4)
}
 0x5cc   :  { %878 = dma.vmem_to_hbm [thread:$0]  %s876_s10, 32, %s1621_s6, [#allocation3]  }
 0x5cd   :  { %1037 = dma.done.wait [#allocation3], 32  }
 0x5ce   :  { %1038 = vsyncadd [#allocation3], 4294967264 }
 0x5cf   :  { %882 = vsyncpa [#allocation3], 1 }

</bundles_post_ra>
